<compile_context>
chip_gen: v6e
topology: v6e:2x2x1
jax: 0.10.0
libtpu: 0.0.40
codegen_flags: <defaults>
</compile_context>

<pallas_src>
import jax
import jax.numpy as jnp
from jax.experimental import pallas as pl
from jax.experimental.pallas import tpu as pltpu


def _mlp_kernel(x_ref,
                w1_ref, b1_ref,
                w2_ref, b2_ref,
                w3_ref, b3_ref,
                w4_ref, b4_ref,
                w5_ref, b5_ref,
                o_ref):
    """Fused transposed-MLP forward for one batch tile of tm columns.

    x_ref:  (d_in, tm) f32   -- lane-dense, already transposed in the wrapper
    w*_ref: PyTorch-layout (out, in) f32 weights
    b*_ref: (out, 1) f32 biases (broadcast over the tm lanes)
    o_ref:  (1, tm) f32 sigmoid probabilities (lane-dense store)
    """
    # Layer 1: (H, d_in) @ (d_in, tm) -> (H, tm)
    h = jnp.dot(w1_ref[...], x_ref[...], preferred_element_type=jnp.float32)
    h = jnp.maximum(h + b1_ref[...], 0.0)

    # Hidden layers 2..4: (H, H) @ (H, tm) -> (H, tm)
    for w_ref, b_ref in ((w2_ref, b2_ref), (w3_ref, b3_ref), (w4_ref, b4_ref)):
        h = jnp.dot(w_ref[...], h, preferred_element_type=jnp.float32)
        h = jnp.maximum(h + b_ref[...], 0.0)

    # Head: (1, H) @ (H, tm) -> (1, tm) logits, then sigmoid.
    logits = jnp.dot(w5_ref[...], h, preferred_element_type=jnp.float32)
    logits = logits + b5_ref[...]
    # Only 1 x tm elements; a plain divide is negligible and lowers everywhere.
    o_ref[...] = 1.0 / (1.0 + jnp.exp(-logits))


def domain_classifier_forward(x, params, *, tm=2048):
    """Fused MLP forward. x: (N, input_dim) f32. Returns (N, 1) f32 probs."""
    (w1, b1), (w2, b2), (w3, b3), (w4, b4), (w5, b5) = params
    x = x.astype(jnp.float32)
    n, d_in = x.shape
    hidden = w1.shape[1]

    # Tile must be a lane multiple; clamp to the rounded-up batch so a small
    # batch does not allocate / compute over a huge mostly-dead tile.
    # (On v7x, pick tm so cdiv(N, tm) >= 2 when N is large enough -- the
    # "parallel" grid axis then shards tiles across both TensorCores.)
    tm = max(128, ((tm + 127) // 128) * 128)
    tm = min(tm, ((n + 127) // 128) * 128)
    n_tiles = pl.cdiv(n, tm)

    # Lane-dense transposed input: (d_in, N), tiled (d_in, tm).  No batch pad;
    # Pallas masks the partial last block and garbage stays in dead columns.
    xt = x.T

    # PyTorch-native (out, in) weight layout; biases as columns for broadcast.
    w1t = w1.T.astype(jnp.float32)          # (H, d_in)
    w2t = w2.T.astype(jnp.float32)          # (H, H)
    w3t = w3.T.astype(jnp.float32)
    w4t = w4.T.astype(jnp.float32)
    w5t = w5.T.astype(jnp.float32)          # (1, H)

    b1c = b1.reshape(hidden, 1).astype(jnp.float32)
    b2c = b2.reshape(hidden, 1).astype(jnp.float32)
    b3c = b3.reshape(hidden, 1).astype(jnp.float32)
    b4c = b4.reshape(hidden, 1).astype(jnp.float32)
    b5c = b5.reshape(1, 1).astype(jnp.float32)

    def resident(shape):
        # Whole-array block, same block index every grid step -> DMA'd once,
        # stays VMEM-resident across the batch grid.
        return pl.BlockSpec(shape, lambda i, _r=len(shape): (0,) * _r)

    out = pl.pallas_call(
        _mlp_kernel,
        out_shape=jax.ShapeDtypeStruct((1, n), jnp.float32),
        grid_spec=pltpu.PrefetchScalarGridSpec(
            num_scalar_prefetch=0,
            grid=(n_tiles,),
            in_specs=[
                pl.BlockSpec((d_in, tm), lambda i: (0, i)),        # x tile
                resident((hidden, d_in)), resident((hidden, 1)),   # layer 1
                resident((hidden, hidden)), resident((hidden, 1)), # layer 2
                resident((hidden, hidden)), resident((hidden, 1)), # layer 3
                resident((hidden, hidden)), resident((hidden, 1)), # layer 4
                resident((1, hidden)), resident((1, 1)),           # head
            ],
            out_specs=pl.BlockSpec((1, tm), lambda i: (0, i)),
        ),
        compiler_params=pltpu.CompilerParams(
            dimension_semantics=("parallel",)),
    )(xt, w1t, b1c, w2t, b2c, w3t, b3c, w4t, b4c, w5t, b5c)

    # (1, N) -> (N, 1); metadata-only reshape, no padded slab, no slice.
    return out.reshape(n, 1)


def init_params(key, input_dim, hidden_dims=128, num_layers=5):
    """Deterministic PyTorch-style init: U(-1/sqrt(fan_in), 1/sqrt(fan_in))."""
    assert num_layers == 5, "this script instantiates the default num_layers=5"
    dims = [input_dim] + [hidden_dims] * (num_layers - 1) + [1]
    params = []
    for i in range(num_layers):
        fan_in, fan_out = dims[i], dims[i + 1]
        key, kw, kb = jax.random.split(key, 3)
        bound = 1.0 / jnp.sqrt(fan_in)
        w = jax.random.uniform(kw, (fan_in, fan_out), jnp.float32, -bound, bound)
        b = jax.random.uniform(kb, (fan_out,), jnp.float32, -bound, bound)
        params.append((w, b))
    return params


def reference_forward_f32(x, params):
    """Pure-f32 reference matching the original module semantics exactly."""
    h = x.astype(jnp.float32)
    for i, (w, b) in enumerate(params):
        h = h @ w + b
        if i < len(params) - 1:
            h = jnp.maximum(h, 0.0)
    return 1.0 / (1.0 + jnp.exp(-h))


# TODO(synk): fit()/Adam/BCELoss training, predict()'s pandas handling and
# get_auc (sklearn roc_curve/auc) are host-side / training concerns, not part
# of the forward kernel; only the forward pass is implemented here.

if __name__ == "__main__":
    key = jax.random.PRNGKey(0)
    k_x, k_p = jax.random.split(key)

    batch = 8
    input_dim = 16
    hidden = 128
    num_layers = 5

    x = jax.random.normal(k_x, (batch, input_dim), jnp.float32)
    params = init_params(k_p, input_dim, hidden_dims=hidden, num_layers=num_layers)

    y = jax.jit(domain_classifier_forward)(x, params)
    y = jax.block_until_ready(y)
    assert y.shape == (batch, 1)

    # The kernel is pure f32, so it should match the original semantics tightly
    # (only accumulation-order differences from the transposed formulation).
    y_ref = reference_forward_f32(x, params)
    assert jnp.allclose(y, y_ref, atol=1e-5, rtol=1e-5), "mismatch vs f32 reference"

    print("KERNEL_OK")
</pallas_src>

<mosaic_0001>
module attributes {stable_mosaic.version = 11 : i64} {
  func.func @_mlp_kernel(%arg0: i32, %arg1: memref<16x128xf32, #tpu.memory_space<vmem>>, %arg2: memref<128x16xf32, #tpu.memory_space<vmem>>, %arg3: memref<128x1xf32, #tpu.memory_space<vmem>>, %arg4: memref<128x128xf32, #tpu.memory_space<vmem>>, %arg5: memref<128x1xf32, #tpu.memory_space<vmem>>, %arg6: memref<128x128xf32, #tpu.memory_space<vmem>>, %arg7: memref<128x1xf32, #tpu.memory_space<vmem>>, %arg8: memref<128x128xf32, #tpu.memory_space<vmem>>, %arg9: memref<128x1xf32, #tpu.memory_space<vmem>>, %arg10: memref<1x128xf32, #tpu.memory_space<vmem>>, %arg11: memref<1x1xf32, #tpu.memory_space<vmem>>, %arg12: memref<1x128xf32, #tpu.memory_space<vmem>>) attributes {dimension_semantics = [#tpu.dimension_semantics<parallel>], iteration_bounds = array<i64: 1>, scalar_prefetch = 0 : i64, scratch_operands = 0 : i64, tpu.core_type = #tpu.core_type<tc>, window_params = [{transform_indices = @transform_0, window_bounds = array<i64: 16, 128>}, {pipeline_mode = #tpu.pipeline_mode<synchronous>, transform_indices = @transform_1, window_bounds = array<i64: 128, 16>}, {pipeline_mode = #tpu.pipeline_mode<synchronous>, transform_indices = @transform_2, window_bounds = array<i64: 128, 1>}, {pipeline_mode = #tpu.pipeline_mode<synchronous>, transform_indices = @transform_3, window_bounds = array<i64: 128, 128>}, {pipeline_mode = #tpu.pipeline_mode<synchronous>, transform_indices = @transform_4, window_bounds = array<i64: 128, 1>}, {pipeline_mode = #tpu.pipeline_mode<synchronous>, transform_indices = @transform_5, window_bounds = array<i64: 128, 128>}, {pipeline_mode = #tpu.pipeline_mode<synchronous>, transform_indices = @transform_6, window_bounds = array<i64: 128, 1>}, {pipeline_mode = #tpu.pipeline_mode<synchronous>, transform_indices = @transform_7, window_bounds = array<i64: 128, 128>}, {pipeline_mode = #tpu.pipeline_mode<synchronous>, transform_indices = @transform_8, window_bounds = array<i64: 128, 1>}, {pipeline_mode = #tpu.pipeline_mode<synchronous>, transform_indices = @transform_9, window_bounds = array<i64: 1, 128>}, {pipeline_mode = #tpu.pipeline_mode<synchronous>, transform_indices = @transform_10, window_bounds = array<i64: 1, 1>}, {transform_indices = @transform_11, window_bounds = array<i64: 1, 128>}]} {
    %c0 = arith.constant 0 : index
    %c0_0 = arith.constant 0 : index
    %0 = vector.load %arg2[%c0, %c0_0] : memref<128x16xf32, #tpu.memory_space<vmem>>, vector<128x16xf32>
    %c0_1 = arith.constant 0 : index
    %c0_2 = arith.constant 0 : index
    %1 = vector.load %arg1[%c0_1, %c0_2] : memref<16x128xf32, #tpu.memory_space<vmem>>, vector<16x128xf32>
    %cst = arith.constant dense<0.000000e+00> : vector<128x128xf32>
    %2 = tpu.matmul %0, %1, %cst {dimension_numbers = #tpu.dot_dimension_numbers<[1], [0], [0], [1], [0, 0, 1, 1], [], []>} : vector<128x16xf32>, vector<16x128xf32>, vector<128x128xf32> -> vector<128x128xf32>
    %c0_3 = arith.constant 0 : index
    %c0_4 = arith.constant 0 : index
    %3 = vector.load %arg3[%c0_3, %c0_4] : memref<128x1xf32, #tpu.memory_space<vmem>>, vector<128x1xf32>
    %4 = vector.broadcast %3 : vector<128x1xf32> to vector<128x128xf32>
    %5 = arith.addf %2, %4 : vector<128x128xf32>
    %cst_5 = arith.constant 0.000000e+00 : f32
    %6 = vector.broadcast %cst_5 : f32 to vector<128x128xf32>
    %7 = arith.maximumf %5, %6 : vector<128x128xf32>
    %c0_6 = arith.constant 0 : index
    %c0_7 = arith.constant 0 : index
    %8 = vector.load %arg4[%c0_6, %c0_7] : memref<128x128xf32, #tpu.memory_space<vmem>>, vector<128x128xf32>
    %cst_8 = arith.constant dense<0.000000e+00> : vector<128x128xf32>
    %9 = tpu.matmul %8, %7, %cst_8 {dimension_numbers = #tpu.dot_dimension_numbers<[1], [0], [0], [1], [0, 0, 1, 1], [], []>} : vector<128x128xf32>, vector<128x128xf32>, vector<128x128xf32> -> vector<128x128xf32>
    %c0_9 = arith.constant 0 : index
    %c0_10 = arith.constant 0 : index
    %10 = vector.load %arg5[%c0_9, %c0_10] : memref<128x1xf32, #tpu.memory_space<vmem>>, vector<128x1xf32>
    %11 = vector.broadcast %10 : vector<128x1xf32> to vector<128x128xf32>
    %12 = arith.addf %9, %11 : vector<128x128xf32>
    %cst_11 = arith.constant 0.000000e+00 : f32
    %13 = vector.broadcast %cst_11 : f32 to vector<128x128xf32>
    %14 = arith.maximumf %12, %13 : vector<128x128xf32>
    %c0_12 = arith.constant 0 : index
    %c0_13 = arith.constant 0 : index
    %15 = vector.load %arg6[%c0_12, %c0_13] : memref<128x128xf32, #tpu.memory_space<vmem>>, vector<128x128xf32>
    %cst_14 = arith.constant dense<0.000000e+00> : vector<128x128xf32>
    %16 = tpu.matmul %15, %14, %cst_14 {dimension_numbers = #tpu.dot_dimension_numbers<[1], [0], [0], [1], [0, 0, 1, 1], [], []>} : vector<128x128xf32>, vector<128x128xf32>, vector<128x128xf32> -> vector<128x128xf32>
    %c0_15 = arith.constant 0 : index
    %c0_16 = arith.constant 0 : index
    %17 = vector.load %arg7[%c0_15, %c0_16] : memref<128x1xf32, #tpu.memory_space<vmem>>, vector<128x1xf32>
    %18 = vector.broadcast %17 : vector<128x1xf32> to vector<128x128xf32>
    %19 = arith.addf %16, %18 : vector<128x128xf32>
    %cst_17 = arith.constant 0.000000e+00 : f32
    %20 = vector.broadcast %cst_17 : f32 to vector<128x128xf32>
    %21 = arith.maximumf %19, %20 : vector<128x128xf32>
    %c0_18 = arith.constant 0 : index
    %c0_19 = arith.constant 0 : index
    %22 = vector.load %arg8[%c0_18, %c0_19] : memref<128x128xf32, #tpu.memory_space<vmem>>, vector<128x128xf32>
    %cst_20 = arith.constant dense<0.000000e+00> : vector<128x128xf32>
    %23 = tpu.matmul %22, %21, %cst_20 {dimension_numbers = #tpu.dot_dimension_numbers<[1], [0], [0], [1], [0, 0, 1, 1], [], []>} : vector<128x128xf32>, vector<128x128xf32>, vector<128x128xf32> -> vector<128x128xf32>
    %c0_21 = arith.constant 0 : index
    %c0_22 = arith.constant 0 : index
    %24 = vector.load %arg9[%c0_21, %c0_22] : memref<128x1xf32, #tpu.memory_space<vmem>>, vector<128x1xf32>
    %25 = vector.broadcast %24 : vector<128x1xf32> to vector<128x128xf32>
    %26 = arith.addf %23, %25 : vector<128x128xf32>
    %cst_23 = arith.constant 0.000000e+00 : f32
    %27 = vector.broadcast %cst_23 : f32 to vector<128x128xf32>
    %28 = arith.maximumf %26, %27 : vector<128x128xf32>
    %c0_24 = arith.constant 0 : index
    %c0_25 = arith.constant 0 : index
    %29 = vector.load %arg10[%c0_24, %c0_25] : memref<1x128xf32, #tpu.memory_space<vmem>>, vector<1x128xf32>
    %cst_26 = arith.constant dense<0.000000e+00> : vector<1x128xf32>
    %30 = tpu.matmul %29, %28, %cst_26 {dimension_numbers = #tpu.dot_dimension_numbers<[1], [0], [0], [1], [0, 0, 1, 1], [], []>} : vector<1x128xf32>, vector<128x128xf32>, vector<1x128xf32> -> vector<1x128xf32>
    %c0_27 = arith.constant 0 : index
    %c0_28 = arith.constant 0 : index
    %31 = vector.load %arg11[%c0_27, %c0_28] : memref<1x1xf32, #tpu.memory_space<vmem>>, vector<1x1xf32>
    %32 = vector.broadcast %31 : vector<1x1xf32> to vector<1x128xf32>
    %33 = arith.addf %30, %32 : vector<1x128xf32>
    %cst_29 = arith.constant 0.000000e+00 : f32
    %34 = vector.broadcast %cst_29 : f32 to vector<1x128xf32>
    %35 = arith.subf %34, %33 : vector<1x128xf32>
    %36 = math.exp %35 : vector<1x128xf32>
    %cst_30 = arith.constant 1.000000e+00 : f32
    %37 = vector.broadcast %cst_30 : f32 to vector<1x128xf32>
    %38 = arith.addf %37, %36 : vector<1x128xf32>
    %cst_31 = arith.constant 1.000000e+00 : f32
    %39 = vector.broadcast %cst_31 : f32 to vector<1x128xf32>
    %40 = arith.divf %39, %38 : vector<1x128xf32>
    %c0_32 = arith.constant 0 : index
    %c0_33 = arith.constant 0 : index
    %41 = vector.load %arg12[%c0_32, %c0_33] : memref<1x128xf32, #tpu.memory_space<vmem>>, vector<1x128xf32>
    tpu.vector_store %arg12[%c0_32, %c0_33], %40 {strides = array<i32>} : memref<1x128xf32, #tpu.memory_space<vmem>>, vector<1x128xf32>,
    return
  }
  func.func @transform_0(%arg0: i32) -> (i32, i32) {
    %c0_i32 = arith.constant 0 : i32
    %c0_i32_0 = arith.constant 0 : i32
    return %c0_i32, %arg0 : i32, i32
  }
  func.func @transform_1(%arg0: i32) -> (i32, i32) {
    %c0_i32 = arith.constant 0 : i32
    %c0_i32_0 = arith.constant 0 : i32
    %c0_i32_1 = arith.constant 0 : i32
    return %c0_i32, %c0_i32_0 : i32, i32
  }
  func.func @transform_2(%arg0: i32) -> (i32, i32) {
    %c0_i32 = arith.constant 0 : i32
    %c0_i32_0 = arith.constant 0 : i32
    %c0_i32_1 = arith.constant 0 : i32
    return %c0_i32, %c0_i32_0 : i32, i32
  }
  func.func @transform_3(%arg0: i32) -> (i32, i32) {
    %c0_i32 = arith.constant 0 : i32
    %c0_i32_0 = arith.constant 0 : i32
    %c0_i32_1 = arith.constant 0 : i32
    return %c0_i32, %c0_i32_0 : i32, i32
  }
  func.func @transform_4(%arg0: i32) -> (i32, i32) {
    %c0_i32 = arith.constant 0 : i32
    %c0_i32_0 = arith.constant 0 : i32
    %c0_i32_1 = arith.constant 0 : i32
    return %c0_i32, %c0_i32_0 : i32, i32
  }
  func.func @transform_5(%arg0: i32) -> (i32, i32) {
    %c0_i32 = arith.constant 0 : i32
    %c0_i32_0 = arith.constant 0 : i32
    %c0_i32_1 = arith.constant 0 : i32
    return %c0_i32, %c0_i32_0 : i32, i32
  }
  func.func @transform_6(%arg0: i32) -> (i32, i32) {
    %c0_i32 = arith.constant 0 : i32
    %c0_i32_0 = arith.constant 0 : i32
    %c0_i32_1 = arith.constant 0 : i32
    return %c0_i32, %c0_i32_0 : i32, i32
  }
  func.func @transform_7(%arg0: i32) -> (i32, i32) {
    %c0_i32 = arith.constant 0 : i32
    %c0_i32_0 = arith.constant 0 : i32
    %c0_i32_1 = arith.constant 0 : i32
    return %c0_i32, %c0_i32_0 : i32, i32
  }
  func.func @transform_8(%arg0: i32) -> (i32, i32) {
    %c0_i32 = arith.constant 0 : i32
    %c0_i32_0 = arith.constant 0 : i32
    %c0_i32_1 = arith.constant 0 : i32
    return %c0_i32, %c0_i32_0 : i32, i32
  }
  func.func @transform_9(%arg0: i32) -> (i32, i32) {
    %c0_i32 = arith.constant 0 : i32
    %c0_i32_0 = arith.constant 0 : i32
    %c0_i32_1 = arith.constant 0 : i32
    return %c0_i32, %c0_i32_0 : i32, i32
  }
  func.func @transform_10(%arg0: i32) -> (i32, i32) {
    %c0_i32 = arith.constant 0 : i32
    %c0_i32_0 = arith.constant 0 : i32
    %c0_i32_1 = arith.constant 0 : i32
    return %c0_i32, %c0_i32_0 : i32, i32
  }
  func.func @transform_11(%arg0: i32) -> (i32, i32) {
    %c0_i32 = arith.constant 0 : i32
    %c0_i32_0 = arith.constant 0 : i32
    return %c0_i32, %arg0 : i32, i32
  }
}

</mosaic_0001>

<bundles_post_ra>
// kernel: domain_classifier_forward.1
= control target key start
LH: loop header
LB: loop body
LE: loop exit
PB: predicated region body
PF: predicated region fallthrough
CT: control target
= control target key end

     0   :  { %s2240_s0 = inlined_call_operand.vmem [shape: f32[16,8], index: 0, kind: input, shape index: {}]   ;;  %s2241_s1 = inlined_call_operand.vmem [shape: f32[128,16], index: 1, kind: input, shape index: {}]   ;;  %s2242_s2 = inlined_call_operand.vmem [shape: f32[128,1], index: 2, kind: input, shape index: {}]   ;;  %s2243_s3 = inlined_call_operand.vmem [shape: f32[128,128], index: 3, kind: input, shape index: {}]   ;;  %s2244_s4 = inlined_call_operand.vmem [shape: f32[128,1], index: 4, kind: input, shape index: {}]   ;;  %s2245_s5 = inlined_call_operand.vmem [shape: f32[128,128], index: 5, kind: input, shape index: {}]   ;;  %s2246_s6 = inlined_call_operand.vmem [shape: f32[128,1], index: 6, kind: input, shape index: {}]   ;;  %s2247_s7 = inlined_call_operand.vmem [shape: f32[128,128], index: 7, kind: input, shape index: {}]   ;;  %s2248_s8 = inlined_call_operand.vmem [shape: f32[128,1], index: 8, kind: input, shape index: {}]   ;;  %s2249_s9 = inlined_call_operand.vmem [shape: f32[1,128], index: 9, kind: input, shape index: {}]   ;;  %s2250_s10 = inlined_call_operand.<no memory space> [shape: f32[1,1], index: 10, kind: input, shape index: {}]   ;;  %s2251_s11 = inlined_call_operand.hbm [shape: f32[1,8], index: 11, kind: output, shape index: {}]  }
   0x1   :  { %v16_v0 = vstv %s2250_s10 }
   0x2   :  { %17 = vst [vmem:[#allocation2] sm:$0x1] %v16_v0 }
   0x3   :  { %v58_v1 = vld [vmem:[%s2240_s0 + $0x8] sm:$0xff]  ;;  %v74_v2 = vld [vmem:[%s2242_s2 + $0x78] sm:$0xff]  ;;  %v1696_v4 = vmov 0   ;;  %v57_v5 = vld [vmem:[%s2240_s0] sm:$0xff]  ;;  %vm155_vm0 = vcmask 130048  }
   0x4   :  { %v72_v3 = vld [vmem:[%s2242_s2 + $0x68] sm:$0xff]  ;;  %1669 = vset.pattern.permute.xlu1 %v1696_v4  ;;  %1668 = vset.pattern.permute.xlu0 %v1696_v4  ;;  %v41_v6 = vld [vmem:[%s2241_s1] sm:$0xff]  ;;  %v73_v8 = vld [vmem:[%s2242_s2 + $0x70] sm:$0xff] }
   0x5   :  { %1433 = vmatprep.subr.mxu0 %v58_v1  ;;  %152 = vperm.xlu0 %1668, %v74_v2   ;;  %v42_v7 = vld [vmem:[%s2241_s1 + $0x8] sm:$0xff]  ;;  %v71_v9 = vld [vmem:[%s2242_s2 + $0x60] sm:$0xff]  ;;  %v43_v10 = vld [vmem:[%s2241_s1 + $0x10] sm:$0xff] }
   0x6   :  { %142 = vperm.xlu1 %1669, %v72_v3   ;;  %1434 = vmatpush3.msra.mxu0 %v58_v1  ;;  %v44_v11 = vld [vmem:[%s2241_s1 + $0x18] sm:$0xff]  ;;  %v69_v13 = vld [vmem:[%s2242_s2 + $0x50] sm:$0xff]  ;;  %v45_v14 = vld [vmem:[%s2241_s1 + $0x20] sm:$0xff] }
   0x7   :  { %1435 = vmatprep.subr.mxu0 %v57_v5  ;;  %1437 = vmatprep.mubr.msk.f32.mxu0 %vm155_vm0, %v41_v6  ;;  %v70_v12 = vld [vmem:[%s2242_s2 + $0x58] sm:$0xff]  ;;  %v46_v15 = vld [vmem:[%s2241_s1 + $0x28] sm:$0xff]  ;;  %v67_v17 = vld [vmem:[%s2242_s2 + $0x40] sm:$0xff] }
   0x8   :  { %1436 = vmatpush3.msra.mxu0 %v57_v5  ;;  %v68_v16 = vld [vmem:[%s2242_s2 + $0x48] sm:$0xff]  ;;  %v47_v18 = vld [vmem:[%s2241_s1 + $0x30] sm:$0xff]  ;;  %v48_v19 = vld [vmem:[%s2241_s1 + $0x38] sm:$0xff] }
   0x9   :  { %1438 = vmatmul.mubr.msk.f32.vlgmr.msra.gmra.mxu0 %vm155_vm0, %v42_v7  ;;  %147 = vperm.xlu0 %1668, %v73_v8   ;;  %v66_v20 = vld [vmem:[%s2242_s2 + $0x38] sm:$0xff]  ;;  %v65_v21 = vld [vmem:[%s2242_s2 + $0x30] sm:$0xff]  ;;  %v49_v22 = vld [vmem:[%s2241_s1 + $0x40] sm:$0xff] }
   0xa   :  { %137 = vperm.xlu1 %1669, %v71_v9   ;;  %1440 = vmatprep.mubr.msk.f32.mxu0 %vm155_vm0, %v43_v10  ;;  %v50_v23 = vld [vmem:[%s2241_s1 + $0x48] sm:$0xff]  ;;  %v63_v25 = vld [vmem:[%s2242_s2 + $0x20] sm:$0xff]  ;;  %v51_v26 = vld [vmem:[%s2241_s1 + $0x50] sm:$0xff] }
   0xb   :  { %v64_v24 = vld [vmem:[%s2242_s2 + $0x28] sm:$0xff]  ;;  %v52_v27 = vld [vmem:[%s2241_s1 + $0x58] sm:$0xff]  ;;  %v61_v29 = vld [vmem:[%s2242_s2 + $0x10] sm:$0xff] }
   0xc   :  { %v62_v28 = vld [vmem:[%s2242_s2 + $0x18] sm:$0xff]  ;;  %v53_v30 = vld [vmem:[%s2241_s1 + $0x60] sm:$0xff]  ;;  %v54_v31 = vld [vmem:[%s2241_s1 + $0x68] sm:$0xff] }
   0xd   :  { %1441 = vmatmul.mubr.msk.f32.gmra.mxu0 %vm155_vm0, %v44_v11  ;;  %132 = vperm.xlu0 %1668, %v70_v12   ;;  %v60_v32 = vld [vmem:[%s2242_s2 + $0x8] sm:$0xff] }
   0xe   :  { %127 = vperm.xlu1 %1669, %v69_v13   ;;  %1443 = vmatprep.mubr.msk.f32.mxu0 %vm155_vm0, %v45_v14 }
  0x11   :  { %1444 = vmatmul.mubr.msk.f32.gmra.mxu0 %vm155_vm0, %v46_v15  ;;  %122 = vperm.xlu0 %1668, %v68_v16  }
  0x12   :  { %117 = vperm.xlu1 %1669, %v67_v17   ;;  %1446 = vmatprep.mubr.msk.f32.mxu0 %vm155_vm0, %v47_v18 }
  0x15   :  { %1447 = vmatmul.mubr.msk.f32.gmra.mxu0 %vm155_vm0, %v48_v19  ;;  %112 = vperm.xlu0 %1668, %v66_v20  }
  0x16   :  { %107 = vperm.xlu1 %1669, %v65_v21   ;;  %1449 = vmatprep.mubr.msk.f32.mxu0 %vm155_vm0, %v49_v22 }
  0x19   :  { %1450 = vmatmul.mubr.msk.f32.gmra.mxu0 %vm155_vm0, %v50_v23  ;;  %102 = vperm.xlu0 %1668, %v64_v24  }
  0x1a   :  { %97 = vperm.xlu1 %1669, %v63_v25   ;;  %1452 = vmatprep.mubr.msk.f32.mxu0 %vm155_vm0, %v51_v26 }
  0x1d   :  { %1453 = vmatmul.mubr.msk.f32.gmra.mxu0 %vm155_vm0, %v52_v27  ;;  %92 = vperm.xlu0 %1668, %v62_v28  }
  0x1e   :  { %87 = vperm.xlu1 %1669, %v61_v29   ;;  %1455 = vmatprep.mubr.msk.f32.mxu0 %vm155_vm0, %v53_v30 }
  0x1f   :  { %18 = vsyncpa [#allocation4], 0  ;;  %v59_v33 = vld [vmem:[%s2242_s2] sm:$0xff]  ;;  %v55_v34 = vld [vmem:[%s2241_s1 + $0x70] sm:$0xff]  ;;  %vm1698_vm1 = vmmov 0   ;;  %s1699_s13 = smov [#allocation3]  }
  0x20   :  { %v56_v35 = vld [vmem:[%s2241_s1 + $0x78] sm:$0xff]  ;;  %v395_v37 = vld [vmem:[%s2244_s4 + $0x70] sm:$0xff]  ;;  %v394_v38 = vld [vmem:[%s2244_s4 + $0x68] sm:$0xff] }
  0x21   :  { %1456 = vmatmul.mubr.msk.f32.gmra.mxu0 %vm155_vm0, %v54_v31  ;;  %82 = vperm.xlu0 %1668, %v60_v32   ;;  %v396_v36 = vld [vmem:[%s2244_s4 + $0x78] sm:$0xff]  ;;  %v393_v39 = vld [vmem:[%s2244_s4 + $0x60] sm:$0xff]  ;;  %v391_v41 = vld [vmem:[%s2244_s4 + $0x50] sm:$0xff] }
  0x22   :  { %77 = vperm.xlu1 %1669, %v59_v33   ;;  %1458 = vmatprep.mubr.msk.f32.mxu0 %vm155_vm0, %v55_v34  ;;  %v392_v40 = vld [vmem:[%s2244_s4 + $0x58] sm:$0xff]  ;;  %v390_v42 = vld [vmem:[%s2244_s4 + $0x48] sm:$0xff]  ;;  %v389_v43 = vld [vmem:[%s2244_s4 + $0x40] sm:$0xff] }
  0x23   :  { %v388_v44 = vld [vmem:[%s2244_s4 + $0x38] sm:$0xff]  ;;  %v387_v45 = vld [vmem:[%s2244_s4 + $0x30] sm:$0xff]  ;;  %v386_v46 = vld [vmem:[%s2244_s4 + $0x28] sm:$0xff] }
  0x24   :  { %v385_v47 = vld [vmem:[%s2244_s4 + $0x20] sm:$0xff]  ;;  %v384_v48 = vld [vmem:[%s2244_s4 + $0x18] sm:$0xff]  ;;  %v383_v49 = vld [vmem:[%s2244_s4 + $0x10] sm:$0xff] }
  0x25   :  { %1459 = vmatmul.mubr.msk.f32.gmra.mxu0 %vm155_vm0, %v56_v35  ;;  %474 = vperm.xlu0 %1668, %v396_v36   ;;  %v382_v50 = vld [vmem:[%s2244_s4 + $0x8] sm:$0xff]  ;;  %v381_v51 = vld [vmem:[%s2244_s4] sm:$0xff]  ;;  %v669_v52 = vld [vmem:[%s2246_s6 + $0x78] sm:$0xff] }
  0x26   :  { %469 = vperm.xlu1 %1669, %v395_v37   ;;  %v668_v53 = vld [vmem:[%s2246_s6 + $0x70] sm:$0xff]  ;;  %v667_v54 = vld [vmem:[%s2246_s6 + $0x68] sm:$0xff]  ;;  %v666_v55 = vld [vmem:[%s2246_s6 + $0x60] sm:$0xff] }
  0x27   :  { %v665_v56 = vld [vmem:[%s2246_s6 + $0x58] sm:$0xff]  ;;  %v664_v57 = vld [vmem:[%s2246_s6 + $0x50] sm:$0xff]  ;;  %v663_v58 = vld [vmem:[%s2246_s6 + $0x48] sm:$0xff] }
  0x28   :  { %v662_v59 = vld [vmem:[%s2246_s6 + $0x40] sm:$0xff]  ;;  %v661_v60 = vld [vmem:[%s2246_s6 + $0x38] sm:$0xff]  ;;  %v660_v61 = vld [vmem:[%s2246_s6 + $0x30] sm:$0xff] }
  0x29   :  { %464 = vperm.xlu0 %1668, %v394_v38   ;;  %v659_v62 = vld [vmem:[%s2246_s6 + $0x28] sm:$0xff]  ;;  %v658_v63 = vld [vmem:[%s2246_s6 + $0x20] sm:$0xff]  ;;  %v657_v0 = vld [vmem:[%s2246_s6 + $0x18] sm:$0xff] }
  0x2a   :  { %459 = vperm.xlu1 %1669, %v393_v39   ;;  %v656_v1 = vld [vmem:[%s2246_s6 + $0x10] sm:$0xff]  ;;  %v655_v2 = vld [vmem:[%s2246_s6 + $0x8] sm:$0xff]  ;;  %v654_v3 = vld [vmem:[%s2246_s6] sm:$0xff] }
  0x2b   :  { %v942_v4 = vld [vmem:[%s2248_s8 + $0x78] sm:$0xff]  ;;  %v941_v5 = vld [vmem:[%s2248_s8 + $0x70] sm:$0xff]  ;;  %v940_v6 = vld [vmem:[%s2248_s8 + $0x68] sm:$0xff] }
  0x2c   :  { %v939_v7 = vld [vmem:[%s2248_s8 + $0x60] sm:$0xff]  ;;  %v938_v8 = vld [vmem:[%s2248_s8 + $0x58] sm:$0xff]  ;;  %v937_v9 = vld [vmem:[%s2248_s8 + $0x50] sm:$0xff] }
  0x2d   :  { %454 = vperm.xlu0 %1668, %v392_v40   ;;  %v936_v10 = vld [vmem:[%s2248_s8 + $0x48] sm:$0xff]  ;;  %v935_v11 = vld [vmem:[%s2248_s8 + $0x40] sm:$0xff]  ;;  %v934_v12 = vld [vmem:[%s2248_s8 + $0x38] sm:$0xff] }
  0x2e   :  { %449 = vperm.xlu1 %1669, %v391_v41   ;;  %v933_v13 = vld [vmem:[%s2248_s8 + $0x30] sm:$0xff]  ;;  %v932_v14 = vld [vmem:[%s2248_s8 + $0x28] sm:$0xff]  ;;  %v931_v15 = vld [vmem:[%s2248_s8 + $0x20] sm:$0xff] }
  0x2f   :  { %v930_v16 = vld [vmem:[%s2248_s8 + $0x18] sm:$0xff]  ;;  %v929_v17 = vld [vmem:[%s2248_s8 + $0x10] sm:$0xff]  ;;  %v928_v18 = vld [vmem:[%s2248_s8 + $0x8] sm:$0xff] }
  0x30   :  { %v927_v19 = vld [vmem:[%s2248_s8] sm:$0xff] }
  0x31   :  { %444 = vperm.xlu0 %1668, %v390_v42   ;;  %v1185_v20 = vld [vmem:[#allocation2] sm:$0x1] }
  0x32   :  { %439 = vperm.xlu1 %1669, %v389_v43   ;;  %v365_v21 = vld [vmem:[%s2243_s3] sm:$0xff] }
  0x33   :  { %1493 = vmatprep.mubr.f32.mxu1 %v365_v21 }
  0x35   :  { %434 = vperm.xlu0 %1668, %v388_v44  }
  0x36   :  { %429 = vperm.xlu1 %1669, %v387_v45  }
  0x39   :  { %424 = vperm.xlu0 %1668, %v386_v46  }
  0x3a   :  { %419 = vperm.xlu1 %1669, %v385_v47  }
  0x3d   :  { %414 = vperm.xlu0 %1668, %v384_v48  }
  0x3e   :  { %409 = vperm.xlu1 %1669, %v383_v49  }
  0x41   :  { %404 = vperm.xlu0 %1668, %v382_v50  }
  0x42   :  { %399 = vperm.xlu1 %1669, %v381_v51  }
  0x45   :  { %747 = vperm.xlu0 %1668, %v669_v52  }
  0x46   :  { %742 = vperm.xlu1 %1669, %v668_v53  }
  0x49   :  { %737 = vperm.xlu0 %1668, %v667_v54  }
  0x4a   :  { %732 = vperm.xlu1 %1669, %v666_v55  }
  0x4d   :  { %727 = vperm.xlu0 %1668, %v665_v56  }
  0x4e   :  { %722 = vperm.xlu1 %1669, %v664_v57  }
  0x51   :  { %717 = vperm.xlu0 %1668, %v663_v58  }
  0x52   :  { %712 = vperm.xlu1 %1669, %v662_v59  }
  0x55   :  { %707 = vperm.xlu0 %1668, %v661_v60  }
  0x56   :  { %702 = vperm.xlu1 %1669, %v660_v61  }
  0x59   :  { %697 = vperm.xlu0 %1668, %v659_v62  }
  0x5a   :  { %692 = vperm.xlu1 %1669, %v658_v63  }
  0x5d   :  { %687 = vperm.xlu0 %1668, %v657_v0  }
  0x5e   :  { %682 = vperm.xlu1 %1669, %v656_v1  }
  0x61   :  { %677 = vperm.xlu0 %1668, %v655_v2  }
  0x62   :  { %672 = vperm.xlu1 %1669, %v654_v3  }
  0x65   :  { %1020 = vperm.xlu0 %1668, %v942_v4  }
  0x66   :  { %1015 = vperm.xlu1 %1669, %v941_v5  }
  0x69   :  { %1010 = vperm.xlu0 %1668, %v940_v6  }
  0x6a   :  { %1005 = vperm.xlu1 %1669, %v939_v7  }
  0x6d   :  { %1000 = vperm.xlu0 %1668, %v938_v8  }
  0x6e   :  { %995 = vperm.xlu1 %1669, %v937_v9  }
  0x71   :  { %990 = vperm.xlu0 %1668, %v936_v10  }
  0x72   :  { %985 = vperm.xlu1 %1669, %v935_v11  }
  0x75   :  { %980 = vperm.xlu0 %1668, %v934_v12  }
  0x76   :  { %975 = vperm.xlu1 %1669, %v933_v13  }
  0x79   :  { %970 = vperm.xlu0 %1668, %v932_v14  }
  0x7a   :  { %965 = vperm.xlu1 %1669, %v931_v15  }
  0x7d   :  { %960 = vperm.xlu0 %1668, %v930_v16  }
  0x7e   :  { %955 = vperm.xlu1 %1669, %v929_v17  }
  0x80   :  { %v153_v28 = vpop.permute.xlu0 %152 }
  0x81   :  { %950 = vperm.xlu0 %1668, %v928_v18   ;;  %v143_v30 = vpop.permute.xlu1 %142 }
  0x82   :  { %945 = vperm.xlu1 %1669, %v927_v19  }
  0x84   :  { %v148_v33 = vpop.permute.xlu0 %147 }
  0x85   :  { %1188 = vperm.xlu0 %1668, %v1185_v20   ;;  %v138_v35 = vpop.permute.xlu1 %137 }
  0x88   :  { %v133_v38 = vpop.permute.xlu0 %132 }
  0x89   :  { %v128_v40 = vpop.permute.xlu1 %127 }
  0x8c   :  { %v123_v44 = vpop.permute.xlu0 %122 }
  0x8d   :  { %v118_v49 = vpop.permute.xlu1 %117 }
  0x90   :  { %v113_v54 = vpop.permute.xlu0 %112 }
  0x91   :  { %v108_v57 = vpop.permute.xlu1 %107 }
  0x94   :  { %v103_v62 = vpop.permute.xlu0 %102 }
  0x95   :  { %v98_v1 = vpop.permute.xlu1 %97 }
  0x98   :  { %v93_v6 = vpop.permute.xlu0 %92 }
  0x99   :  { %v88_v9 = vpop.permute.xlu1 %87 }
  0x9c   :  { %v83_v14 = vpop.permute.xlu0 %82 }
  0x9d   :  { %v78_v17 = vpop.permute.xlu1 %77 }
  0xc9   :  { %v2028_v22 = vpop.f32.mrf.mxu0 }
  0xca   :  { %v276_v15 = vadd.f32 %v2028_v22, %v83_v14  ;;  %v367_v22 = vld [vmem:[%s2243_s3 + $0x10] sm:$0xff] }
  0xcb   :  { %v2030_v23 = vpop.f32.mrf.mxu0 }
  0xcc   :  { %v271_v18 = vadd.f32 %v2030_v23, %v78_v17  ;;  %v350_v20 = vmax.f32 %v276_v15, 0.0  ;;  %v368_v23 = vld [vmem:[%s2243_s3 + $0x18] sm:$0xff] }
  0xcd   :  { %v2032_v24 = vpop.f32.mrf.mxu0 }
  0xce   :  { %v286_v10 = vadd.f32 %v2032_v24, %v93_v6  ;;  %v349_v21 = vmax.f32 %v271_v18, 0.0  ;;  %v366_v24 = vld [vmem:[%s2243_s3 + $0x8] sm:$0xff] }
  0xcf   :  { %v2034_v25 = vpop.f32.mrf.mxu0 }
  0xd0   :  { %v281_v12 = vadd.f32 %v2034_v25, %v88_v9  ;;  %v352_v16 = vmax.f32 %v286_v10, 0.0  ;;  %v369_v25 = vld [vmem:[%s2243_s3 + $0x20] sm:$0xff] }
  0xd1   :  { %v1445_v26 = vpop.f32.mrf.mxu0 }
  0xd2   :  { %v296_v4 = vadd.f32 %v1445_v26, %v103_v62  ;;  %v351_v19 = vmax.f32 %v281_v12, 0.0  ;;  %v370_v26 = vld [vmem:[%s2243_s3 + $0x28] sm:$0xff] }
  0xd3   :  { %v290_v27 = vpop.f32.mrf.mxu0 }
  0xd4   :  { %v291_v7 = vadd.f32 %v290_v27, %v98_v1  ;;  %v354_v11 = vmax.f32 %v296_v4, 0.0  ;;  %v371_v27 = vld [vmem:[%s2243_s3 + $0x30] sm:$0xff] }
  0xd5   :  { %v1448_v29 = vpop.f32.mrf.mxu0 }
  0xd6   :  { %v306_v63 = vadd.f32 %v1448_v29, %v113_v54  ;;  %v353_v13 = vmax.f32 %v291_v7, 0.0  ;;  %v373_v29 = vld [vmem:[%s2243_s3 + $0x40] sm:$0xff] }
  0xd7   :  { %v300_v31 = vpop.f32.mrf.mxu0 }
  0xd8   :  { %v301_v2 = vadd.f32 %v300_v31, %v108_v57  ;;  %v356_v5 = vmax.f32 %v306_v63, 0.0  ;;  %v375_v31 = vld [vmem:[%s2243_s3 + $0x50] sm:$0xff] }
  0xd9   :  { %v1451_v32 = vpop.f32.mrf.mxu0 }
  0xda   :  { %v316_v58 = vadd.f32 %v1451_v32, %v123_v44  ;;  %v355_v8 = vmax.f32 %v301_v2, 0.0  ;;  %v376_v32 = vld [vmem:[%s2243_s3 + $0x58] sm:$0xff]  ;;  %v475_v44 = vpop.permute.xlu0 %474 }
  0xdb   :  { %v310_v34 = vpop.f32.mrf.mxu0 }
  0xdc   :  { %v311_v60 = vadd.f32 %v310_v34, %v118_v49  ;;  %v358_v0 = vmax.f32 %v316_v58, 0.0  ;;  %v378_v34 = vld [vmem:[%s2243_s3 + $0x68] sm:$0xff] }
  0xdd   :  { %v1454_v36 = vpop.f32.mrf.mxu0 }
  0xde   :  { %v326_v52 = vadd.f32 %v1454_v36, %v133_v38  ;;  %v357_v3 = vmax.f32 %v311_v60, 0.0  ;;  %v380_v36 = vld [vmem:[%s2243_s3 + $0x78] sm:$0xff]  ;;  %v465_v49 = vpop.permute.xlu0 %464 }
  0xdf   :  { %v320_v37 = vpop.f32.mrf.mxu0 }
  0xe0   :  { %v321_v55 = vadd.f32 %v320_v37, %v128_v40  ;;  %v360_v59 = vmax.f32 %v326_v52, 0.0  ;;  %v638_v37 = vld [vmem:[%s2245_s5] sm:$0xff] }
  0xe1   :  { %v1457_v39 = vpop.f32.mrf.mxu0  ;;  %1549 = vmatprep.mubr.f32.mxu0 %v638_v37 }
  0xe2   :  { %v336_v46 = vadd.f32 %v1457_v39, %v143_v30  ;;  %v359_v61 = vmax.f32 %v321_v55, 0.0  ;;  %v374_v30 = vld [vmem:[%s2243_s3 + $0x48] sm:$0xff]  ;;  %v455_v54 = vpop.permute.xlu0 %454 }
  0xe3   :  { %v330_v41 = vpop.f32.mrf.mxu0 }
  0xe4   :  { %v331_v50 = vadd.f32 %v330_v41, %v138_v35  ;;  %v362_v53 = vmax.f32 %v336_v46, 0.0  ;;  %v379_v35 = vld [vmem:[%s2243_s3 + $0x70] sm:$0xff]  ;;  %v470_v46 = vpop.permute.xlu1 %469 }
  0xe5   :  { %v1460_v42 = vpop.f32.mrf.mxu0 }
  0xe6   :  { %v346_v43 = vadd.f32 %v1460_v42, %v153_v28  ;;  %v361_v56 = vmax.f32 %v331_v50, 0.0  ;;  %v372_v28 = vld [vmem:[%s2243_s3 + $0x38] sm:$0xff]  ;;  %v445_v60 = vpop.permute.xlu0 %444 }
  0xe7   :  { %v340_v45 = vpop.f32.mrf.mxu0 }
  0xe8   :  { %v364_v47 = vmax.f32 %v346_v43, 0.0  ;;  %v341_v48 = vadd.f32 %v340_v45, %v148_v33  ;;  %v377_v33 = vld [vmem:[%s2243_s3 + $0x60] sm:$0xff] }
  0xea   :  { %v363_v51 = vmax.f32 %v341_v48, 0.0  ;;  %1461 = vmatprep.subr.mxu1 %v364_v47  ;;  %v435_v6 = vpop.permute.xlu0 %434 }
  0xeb   :  { %1462 = vmatpush3.msra.mxu1 %v364_v47 }
  0xec   :  { %1463 = vmatprep.subr.mxu1 %v363_v51 }
  0xed   :  { %1464 = vmatpush3.msra.mxu1 %v363_v51  ;;  %v460_v51 = vpop.permute.xlu1 %459 }
  0xee   :  { %1465 = vmatprep.subr.mxu1 %v362_v53  ;;  %v425_v14 = vpop.permute.xlu0 %424 }
  0xef   :  { %1466 = vmatpush3.msra.mxu1 %v362_v53 }
  0xf0   :  { %1467 = vmatprep.subr.mxu1 %v361_v56 }
  0xf1   :  { %1468 = vmatpush3.msra.mxu1 %v361_v56  ;;  %v450_v56 = vpop.permute.xlu1 %449 }
  0xf2   :  { %1469 = vmatprep.subr.mxu1 %v360_v59 }
  0xf3   :  { %1470 = vmatpush3.msra.mxu1 %v360_v59 }
  0xf4   :  { %1471 = vmatprep.subr.mxu1 %v359_v61 }
  0xf5   :  { %1472 = vmatpush3.msra.mxu1 %v359_v61  ;;  %v440_v1 = vpop.permute.xlu1 %439 }
  0xf6   :  { %1473 = vmatprep.subr.mxu1 %v358_v0 }
  0xf7   :  { %1474 = vmatpush3.msra.mxu1 %v358_v0 }
  0xf8   :  { %1475 = vmatprep.subr.mxu1 %v357_v3 }
  0xf9   :  { %1476 = vmatpush3.msra.mxu1 %v357_v3  ;;  %v430_v9 = vpop.permute.xlu1 %429 }
  0xfa   :  { %1477 = vmatprep.subr.mxu1 %v356_v5 }
  0xfb   :  { %1478 = vmatpush3.msra.mxu1 %v356_v5 }
  0xfc   :  { %1479 = vmatprep.subr.mxu1 %v355_v8 }
  0xfd   :  { %1480 = vmatpush3.msra.mxu1 %v355_v8  ;;  %v420_v17 = vpop.permute.xlu1 %419 }
  0xfe   :  { %1481 = vmatprep.subr.mxu1 %v354_v11 }
  0xff   :  { %1482 = vmatpush3.msra.mxu1 %v354_v11 }
 0x100   :  { %1483 = vmatprep.subr.mxu1 %v353_v13 }
 0x101   :  { %1484 = vmatpush3.msra.mxu1 %v353_v13 }
 0x102   :  { %1485 = vmatprep.subr.mxu1 %v352_v16 }
 0x103   :  { %1486 = vmatpush3.msra.mxu1 %v352_v16 }
 0x104   :  { %1487 = vmatprep.subr.mxu1 %v351_v19 }
 0x105   :  { %1488 = vmatpush3.msra.mxu1 %v351_v19 }
 0x106   :  { %1489 = vmatprep.subr.mxu1 %v350_v20 }
 0x107   :  { %1490 = vmatpush3.msra.mxu1 %v350_v20 }
 0x108   :  { %1491 = vmatprep.subr.mxu1 %v349_v21 }
 0x109   :  { %1492 = vmatpush3.msra.mxu1 %v349_v21 }
 0x10a   :  { %1494 = vmatmul.mubr.f32.vlgmr.msra.gmra.mxu1 %v366_v24  ;;  %v415_v24 = vpop.permute.xlu0 %414 }
 0x10b   :  { %1496 = vmatprep.mubr.f32.mxu1 %v367_v22 }
 0x10e   :  { %1497 = vmatmul.mubr.f32.gmra.mxu1 %v368_v23 }
 0x10f   :  { %1499 = vmatprep.mubr.f32.mxu1 %v369_v25  ;;  %v410_v25 = vpop.permute.xlu1 %409 }
 0x112   :  { %1500 = vmatmul.mubr.f32.gmra.mxu1 %v370_v26 }
 0x113   :  { %1502 = vmatprep.mubr.f32.mxu1 %v371_v27 }
 0x116   :  { %1503 = vmatmul.mubr.f32.gmra.mxu1 %v372_v28 }
 0x117   :  { %1505 = vmatprep.mubr.f32.mxu1 %v373_v29 }
 0x11a   :  { %1506 = vmatmul.mubr.f32.gmra.mxu1 %v374_v30  ;;  %v405_v30 = vpop.permute.xlu0 %404 }
 0x11b   :  { %1508 = vmatprep.mubr.f32.mxu1 %v375_v31 }
 0x11e   :  { %1509 = vmatmul.mubr.f32.gmra.mxu1 %v376_v32 }
 0x11f   :  { %1511 = vmatprep.mubr.f32.mxu1 %v377_v33  ;;  %v400_v33 = vpop.permute.xlu1 %399 }
 0x122   :  { %1512 = vmatmul.mubr.f32.gmra.mxu1 %v378_v34 }
 0x123   :  { %1514 = vmatprep.mubr.f32.mxu1 %v379_v35 }
 0x126   :  { %1515 = vmatmul.mubr.f32.gmra.mxu1 %v380_v36 }
 0x1ca   :  { %v2088_v38 = vpop.f32.mrf.mxu1 }
 0x1cb   :  { %v549_v31 = vadd.f32 %v2088_v38, %v405_v30  ;;  %v640_v38 = vld [vmem:[%s2245_s5 + $0x10] sm:$0xff] }
 0x1cc   :  { %v2090_v39 = vpop.f32.mrf.mxu1 }
 0x1cd   :  { %v544_v34 = vadd.f32 %v2090_v39, %v400_v33  ;;  %v623_v36 = vmax.f32 %v549_v31, 0.0  ;;  %v641_v39 = vld [vmem:[%s2245_s5 + $0x18] sm:$0xff] }
 0x1ce   :  { %v2092_v40 = vpop.f32.mrf.mxu1 }
 0x1cf   :  { %v559_v26 = vadd.f32 %v2092_v40, %v415_v24  ;;  %v622_v37 = vmax.f32 %v544_v34, 0.0  ;;  %v639_v40 = vld [vmem:[%s2245_s5 + $0x8] sm:$0xff] }
 0x1d0   :  { %v2094_v41 = vpop.f32.mrf.mxu1 }
 0x1d1   :  { %v554_v28 = vadd.f32 %v2094_v41, %v410_v25  ;;  %v625_v32 = vmax.f32 %v559_v26, 0.0  ;;  %v642_v41 = vld [vmem:[%s2245_s5 + $0x20] sm:$0xff] }
 0x1d2   :  { %v1501_v42 = vpop.f32.mrf.mxu1 }
 0x1d3   :  { %v569_v20 = vadd.f32 %v1501_v42, %v425_v14  ;;  %v624_v35 = vmax.f32 %v554_v28, 0.0  ;;  %v643_v42 = vld [vmem:[%s2245_s5 + $0x28] sm:$0xff] }
 0x1d4   :  { %v563_v43 = vpop.f32.mrf.mxu1 }
 0x1d5   :  { %v564_v22 = vadd.f32 %v563_v43, %v420_v17  ;;  %v627_v27 = vmax.f32 %v569_v20, 0.0  ;;  %v644_v43 = vld [vmem:[%s2245_s5 + $0x30] sm:$0xff] }
 0x1d6   :  { %v1504_v45 = vpop.f32.mrf.mxu1 }
 0x1d7   :  { %v579_v15 = vadd.f32 %v1504_v45, %v435_v6  ;;  %v626_v29 = vmax.f32 %v564_v22, 0.0  ;;  %v646_v45 = vld [vmem:[%s2245_s5 + $0x40] sm:$0xff] }
 0x1d8   :  { %v573_v47 = vpop.f32.mrf.mxu1 }
 0x1d9   :  { %v574_v18 = vadd.f32 %v573_v47, %v430_v9  ;;  %v629_v21 = vmax.f32 %v579_v15, 0.0  ;;  %v648_v47 = vld [vmem:[%s2245_s5 + $0x50] sm:$0xff] }
 0x1da   :  { %v1507_v48 = vpop.f32.mrf.mxu1 }
 0x1db   :  { %v589_v10 = vadd.f32 %v1507_v48, %v445_v60  ;;  %v628_v23 = vmax.f32 %v574_v18, 0.0  ;;  %v649_v48 = vld [vmem:[%s2245_s5 + $0x58] sm:$0xff]  ;;  %v748_v60 = vpop.permute.xlu0 %747 }
 0x1dc   :  { %v583_v50 = vpop.f32.mrf.mxu1 }
 0x1dd   :  { %v584_v12 = vadd.f32 %v583_v50, %v440_v1  ;;  %v631_v16 = vmax.f32 %v589_v10, 0.0  ;;  %v651_v50 = vld [vmem:[%s2245_s5 + $0x68] sm:$0xff] }
 0x1de   :  { %v1510_v52 = vpop.f32.mrf.mxu1 }
 0x1df   :  { %v599_v4 = vadd.f32 %v1510_v52, %v455_v54  ;;  %v630_v19 = vmax.f32 %v584_v12, 0.0  ;;  %v653_v52 = vld [vmem:[%s2245_s5 + $0x78] sm:$0xff]  ;;  %v738_v1 = vpop.permute.xlu0 %737 }
 0x1e0   :  { %v593_v53 = vpop.f32.mrf.mxu1 }
 0x1e1   :  { %v594_v7 = vadd.f32 %v593_v53, %v450_v56  ;;  %v633_v11 = vmax.f32 %v599_v4, 0.0  ;;  %v911_v53 = vld [vmem:[%s2247_s7] sm:$0xff] }
 0x1e2   :  { %v1513_v55 = vpop.f32.mrf.mxu1  ;;  %1605 = vmatprep.mubr.f32.mxu1 %v911_v53 }
 0x1e3   :  { %v609_v62 = vadd.f32 %v1513_v55, %v465_v49  ;;  %v632_v13 = vmax.f32 %v594_v7, 0.0  ;;  %v650_v49 = vld [vmem:[%s2245_s5 + $0x60] sm:$0xff]  ;;  %v728_v6 = vpop.permute.xlu0 %727 }
 0x1e4   :  { %v603_v57 = vpop.f32.mrf.mxu1 }
 0x1e5   :  { %v604_v2 = vadd.f32 %v603_v57, %v460_v51  ;;  %v635_v5 = vmax.f32 %v609_v62, 0.0  ;;  %v652_v51 = vld [vmem:[%s2245_s5 + $0x70] sm:$0xff]  ;;  %v743_v62 = vpop.permute.xlu1 %742 }
 0x1e6   :  { %v1516_v58 = vpop.f32.mrf.mxu1 }
 0x1e7   :  { %v619_v59 = vadd.f32 %v1516_v58, %v475_v44  ;;  %v634_v8 = vmax.f32 %v604_v2, 0.0  ;;  %v645_v44 = vld [vmem:[%s2245_s5 + $0x38] sm:$0xff]  ;;  %v718_v12 = vpop.permute.xlu0 %717 }
 0x1e8   :  { %v613_v61 = vpop.f32.mrf.mxu1 }
 0x1e9   :  { %v637_v63 = vmax.f32 %v619_v59, 0.0  ;;  %v614_v0 = vadd.f32 %v613_v61, %v470_v46  ;;  %v647_v46 = vld [vmem:[%s2245_s5 + $0x48] sm:$0xff] }
 0x1eb   :  { %v636_v3 = vmax.f32 %v614_v0, 0.0  ;;  %1517 = vmatprep.subr.mxu0 %v637_v63  ;;  %v708_v24 = vpop.permute.xlu0 %707 }
 0x1ec   :  { %1518 = vmatpush3.msra.mxu0 %v637_v63 }
 0x1ed   :  { %1519 = vmatprep.subr.mxu0 %v636_v3 }
 0x1ee   :  { %1520 = vmatpush3.msra.mxu0 %v636_v3  ;;  %v733_v3 = vpop.permute.xlu1 %732 }
 0x1ef   :  { %1521 = vmatprep.subr.mxu0 %v635_v5  ;;  %v698_v30 = vpop.permute.xlu0 %697 }
 0x1f0   :  { %1522 = vmatpush3.msra.mxu0 %v635_v5 }
 0x1f1   :  { %1523 = vmatprep.subr.mxu0 %v634_v8 }
 0x1f2   :  { %1524 = vmatpush3.msra.mxu0 %v634_v8  ;;  %v723_v8 = vpop.permute.xlu1 %722 }
 0x1f3   :  { %1525 = vmatprep.subr.mxu0 %v633_v11 }
 0x1f4   :  { %1526 = vmatpush3.msra.mxu0 %v633_v11 }
 0x1f5   :  { %1527 = vmatprep.subr.mxu0 %v632_v13 }
 0x1f6   :  { %1528 = vmatpush3.msra.mxu0 %v632_v13  ;;  %v713_v17 = vpop.permute.xlu1 %712 }
 0x1f7   :  { %1529 = vmatprep.subr.mxu0 %v631_v16 }
 0x1f8   :  { %1530 = vmatpush3.msra.mxu0 %v631_v16 }
 0x1f9   :  { %1531 = vmatprep.subr.mxu0 %v630_v19 }
 0x1fa   :  { %1532 = vmatpush3.msra.mxu0 %v630_v19  ;;  %v703_v25 = vpop.permute.xlu1 %702 }
 0x1fb   :  { %1533 = vmatprep.subr.mxu0 %v629_v21 }
 0x1fc   :  { %1534 = vmatpush3.msra.mxu0 %v629_v21 }
 0x1fd   :  { %1535 = vmatprep.subr.mxu0 %v628_v23 }
 0x1fe   :  { %1536 = vmatpush3.msra.mxu0 %v628_v23  ;;  %v693_v33 = vpop.permute.xlu1 %692 }
 0x1ff   :  { %1537 = vmatprep.subr.mxu0 %v627_v27 }
 0x200   :  { %1538 = vmatpush3.msra.mxu0 %v627_v27 }
 0x201   :  { %1539 = vmatprep.subr.mxu0 %v626_v29 }
 0x202   :  { %1540 = vmatpush3.msra.mxu0 %v626_v29 }
 0x203   :  { %1541 = vmatprep.subr.mxu0 %v625_v32 }
 0x204   :  { %1542 = vmatpush3.msra.mxu0 %v625_v32 }
 0x205   :  { %1543 = vmatprep.subr.mxu0 %v624_v35 }
 0x206   :  { %1544 = vmatpush3.msra.mxu0 %v624_v35 }
 0x207   :  { %1545 = vmatprep.subr.mxu0 %v623_v36 }
 0x208   :  { %1546 = vmatpush3.msra.mxu0 %v623_v36 }
 0x209   :  { %1547 = vmatprep.subr.mxu0 %v622_v37 }
 0x20a   :  { %1548 = vmatpush3.msra.mxu0 %v622_v37 }
 0x20b   :  { %1550 = vmatmul.mubr.f32.vlgmr.msra.gmra.mxu0 %v639_v40  ;;  %v688_v40 = vpop.permute.xlu0 %687 }
 0x20c   :  { %1552 = vmatprep.mubr.f32.mxu0 %v640_v38 }
 0x20f   :  { %1553 = vmatmul.mubr.f32.gmra.mxu0 %v641_v39 }
 0x210   :  { %1555 = vmatprep.mubr.f32.mxu0 %v642_v41  ;;  %v683_v41 = vpop.permute.xlu1 %682 }
 0x213   :  { %1556 = vmatmul.mubr.f32.gmra.mxu0 %v643_v42 }
 0x214   :  { %1558 = vmatprep.mubr.f32.mxu0 %v644_v43 }
 0x217   :  { %1559 = vmatmul.mubr.f32.gmra.mxu0 %v645_v44 }
 0x218   :  { %1561 = vmatprep.mubr.f32.mxu0 %v646_v45 }
 0x21b   :  { %1562 = vmatmul.mubr.f32.gmra.mxu0 %v647_v46  ;;  %v678_v46 = vpop.permute.xlu0 %677 }
 0x21c   :  { %1564 = vmatprep.mubr.f32.mxu0 %v648_v47 }
 0x21f   :  { %1565 = vmatmul.mubr.f32.gmra.mxu0 %v649_v48 }
 0x220   :  { %1567 = vmatprep.mubr.f32.mxu0 %v650_v49  ;;  %v673_v49 = vpop.permute.xlu1 %672 }
 0x223   :  { %1568 = vmatmul.mubr.f32.gmra.mxu0 %v651_v50 }
 0x224   :  { %1570 = vmatprep.mubr.f32.mxu0 %v652_v51 }
 0x227   :  { %1571 = vmatmul.mubr.f32.gmra.mxu0 %v653_v52 }
 0x2cb   :  { %v2148_v54 = vpop.f32.mrf.mxu0 }
 0x2cc   :  { %v822_v47 = vadd.f32 %v2148_v54, %v678_v46  ;;  %v913_v54 = vld [vmem:[%s2247_s7 + $0x10] sm:$0xff] }
 0x2cd   :  { %v2150_v55 = vpop.f32.mrf.mxu0 }
 0x2ce   :  { %v817_v50 = vadd.f32 %v2150_v55, %v673_v49  ;;  %v896_v52 = vmax.f32 %v822_v47, 0.0  ;;  %v914_v55 = vld [vmem:[%s2247_s7 + $0x18] sm:$0xff] }
 0x2cf   :  { %v2152_v56 = vpop.f32.mrf.mxu0 }
 0x2d0   :  { %v832_v42 = vadd.f32 %v2152_v56, %v688_v40  ;;  %v895_v53 = vmax.f32 %v817_v50, 0.0  ;;  %v912_v56 = vld [vmem:[%s2247_s7 + $0x8] sm:$0xff] }
 0x2d1   :  { %v2154_v57 = vpop.f32.mrf.mxu0 }
 0x2d2   :  { %v827_v44 = vadd.f32 %v2154_v57, %v683_v41  ;;  %v898_v48 = vmax.f32 %v832_v42, 0.0  ;;  %v915_v57 = vld [vmem:[%s2247_s7 + $0x20] sm:$0xff] }
 0x2d3   :  { %v1557_v58 = vpop.f32.mrf.mxu0 }
 0x2d4   :  { %v842_v36 = vadd.f32 %v1557_v58, %v698_v30  ;;  %v897_v51 = vmax.f32 %v827_v44, 0.0  ;;  %v916_v58 = vld [vmem:[%s2247_s7 + $0x28] sm:$0xff] }
 0x2d5   :  { %v836_v59 = vpop.f32.mrf.mxu0 }
 0x2d6   :  { %v837_v38 = vadd.f32 %v836_v59, %v693_v33  ;;  %v900_v43 = vmax.f32 %v842_v36, 0.0  ;;  %v917_v59 = vld [vmem:[%s2247_s7 + $0x30] sm:$0xff] }
 0x2d7   :  { %v1560_v61 = vpop.f32.mrf.mxu0 }
 0x2d8   :  { %v852_v31 = vadd.f32 %v1560_v61, %v708_v24  ;;  %v899_v45 = vmax.f32 %v837_v38, 0.0  ;;  %v919_v61 = vld [vmem:[%s2247_s7 + $0x40] sm:$0xff] }
 0x2d9   :  { %v846_v63 = vpop.f32.mrf.mxu0 }
 0x2da   :  { %v847_v34 = vadd.f32 %v846_v63, %v703_v25  ;;  %v902_v37 = vmax.f32 %v852_v31, 0.0  ;;  %v921_v63 = vld [vmem:[%s2247_s7 + $0x50] sm:$0xff] }
 0x2db   :  { %v1563_v0 = vpop.f32.mrf.mxu0 }
 0x2dc   :  { %v862_v26 = vadd.f32 %v1563_v0, %v718_v12  ;;  %v901_v39 = vmax.f32 %v847_v34, 0.0  ;;  %v922_v0 = vld [vmem:[%s2247_s7 + $0x58] sm:$0xff]  ;;  %v1021_v12 = vpop.permute.xlu0 %1020 }
 0x2dd   :  { %v856_v2 = vpop.f32.mrf.mxu0 }
 0x2de   :  { %v857_v28 = vadd.f32 %v856_v2, %v713_v17  ;;  %v904_v32 = vmax.f32 %v862_v26, 0.0  ;;  %v924_v2 = vld [vmem:[%s2247_s7 + $0x68] sm:$0xff] }
 0x2df   :  { %v1566_v4 = vpop.f32.mrf.mxu0 }
 0x2e0   :  { %v872_v20 = vadd.f32 %v1566_v4, %v728_v6  ;;  %v903_v35 = vmax.f32 %v857_v28, 0.0  ;;  %v926_v4 = vld [vmem:[%s2247_s7 + $0x78] sm:$0xff]  ;;  %v1011_v17 = vpop.permute.xlu0 %1010 }
 0x2e1   :  { %v866_v5 = vpop.f32.mrf.mxu0 }
 0x2e2   :  { %v867_v22 = vadd.f32 %v866_v5, %v723_v8  ;;  %v906_v27 = vmax.f32 %v872_v20, 0.0  ;;  %v1697_v5 = vmov 0.0  }
 0x2e3   :  { %v1569_v7 = vpop.f32.mrf.mxu0  ;;  %1629 = vmatprep.subr.mxu0 %v1697_v5  ;;  %1661 = vmatprep.mubr.msk.f32.mxu0 %vm1698_vm1, %v1697_v5 }
 0x2e4   :  { %v882_v14 = vadd.f32 %v1569_v7, %v738_v1  ;;  %v905_v29 = vmax.f32 %v867_v22, 0.0  ;;  %v923_v1 = vld [vmem:[%s2247_s7 + $0x60] sm:$0xff]  ;;  %v1001_v24 = vpop.permute.xlu0 %1000 }
 0x2e5   :  { %v876_v9 = vpop.f32.mrf.mxu0 }
 0x2e6   :  { %v877_v18 = vadd.f32 %v876_v9, %v733_v3  ;;  %v908_v21 = vmax.f32 %v882_v14, 0.0  ;;  %v925_v3 = vld [vmem:[%s2247_s7 + $0x70] sm:$0xff]  ;;  %v1016_v14 = vpop.permute.xlu1 %1015 }
 0x2e7   :  { %v1572_v10 = vpop.f32.mrf.mxu0 }
 0x2e8   :  { %v892_v11 = vadd.f32 %v1572_v10, %v748_v60  ;;  %v907_v23 = vmax.f32 %v877_v18, 0.0  ;;  %v918_v60 = vld [vmem:[%s2247_s7 + $0x38] sm:$0xff]  ;;  %v991_v28 = vpop.permute.xlu0 %990 }
 0x2e9   :  { %v886_v13 = vpop.f32.mrf.mxu0 }
 0x2ea   :  { %v910_v15 = vmax.f32 %v892_v11, 0.0  ;;  %v887_v16 = vadd.f32 %v886_v13, %v743_v62  ;;  %v920_v62 = vld [vmem:[%s2247_s7 + $0x48] sm:$0xff] }
 0x2ec   :  { %v909_v19 = vmax.f32 %v887_v16, 0.0  ;;  %1573 = vmatprep.subr.mxu1 %v910_v15  ;;  %v981_v40 = vpop.permute.xlu0 %980 }
 0x2ed   :  { %1574 = vmatpush3.msra.mxu1 %v910_v15 }
 0x2ee   :  { %1575 = vmatprep.subr.mxu1 %v909_v19 }
 0x2ef   :  { %1576 = vmatpush3.msra.mxu1 %v909_v19  ;;  %v1006_v19 = vpop.permute.xlu1 %1005 }
 0x2f0   :  { %1577 = vmatprep.subr.mxu1 %v908_v21  ;;  %v971_v46 = vpop.permute.xlu0 %970 }
 0x2f1   :  { %1578 = vmatpush3.msra.mxu1 %v908_v21 }
 0x2f2   :  { %1579 = vmatprep.subr.mxu1 %v907_v23 }
 0x2f3   :  { %1580 = vmatpush3.msra.mxu1 %v907_v23  ;;  %v996_v23 = vpop.permute.xlu1 %995 }
 0x2f4   :  { %1581 = vmatprep.subr.mxu1 %v906_v27 }
 0x2f5   :  { %1582 = vmatpush3.msra.mxu1 %v906_v27 }
 0x2f6   :  { %1583 = vmatprep.subr.mxu1 %v905_v29 }
 0x2f7   :  { %1584 = vmatpush3.msra.mxu1 %v905_v29  ;;  %v986_v33 = vpop.permute.xlu1 %985 }
 0x2f8   :  { %1585 = vmatprep.subr.mxu1 %v904_v32 }
 0x2f9   :  { %1586 = vmatpush3.msra.mxu1 %v904_v32 }
 0x2fa   :  { %1587 = vmatprep.subr.mxu1 %v903_v35 }
 0x2fb   :  { %1588 = vmatpush3.msra.mxu1 %v903_v35  ;;  %v976_v41 = vpop.permute.xlu1 %975 }
 0x2fc   :  { %1589 = vmatprep.subr.mxu1 %v902_v37 }
 0x2fd   :  { %1590 = vmatpush3.msra.mxu1 %v902_v37 }
 0x2fe   :  { %1591 = vmatprep.subr.mxu1 %v901_v39 }
 0x2ff   :  { %1592 = vmatpush3.msra.mxu1 %v901_v39  ;;  %v966_v49 = vpop.permute.xlu1 %965 }
 0x300   :  { %1593 = vmatprep.subr.mxu1 %v900_v43 }
 0x301   :  { %1594 = vmatpush3.msra.mxu1 %v900_v43 }
 0x302   :  { %1595 = vmatprep.subr.mxu1 %v899_v45 }
 0x303   :  { %1596 = vmatpush3.msra.mxu1 %v899_v45 }
 0x304   :  { %1597 = vmatprep.subr.mxu1 %v898_v48 }
 0x305   :  { %1598 = vmatpush3.msra.mxu1 %v898_v48 }
 0x306   :  { %1599 = vmatprep.subr.mxu1 %v897_v51 }
 0x307   :  { %1600 = vmatpush3.msra.mxu1 %v897_v51 }
 0x308   :  { %1601 = vmatprep.subr.mxu1 %v896_v52 }
 0x309   :  { %1602 = vmatpush3.msra.mxu1 %v896_v52 }
 0x30a   :  { %1603 = vmatprep.subr.mxu1 %v895_v53 }
 0x30b   :  { %1604 = vmatpush3.msra.mxu1 %v895_v53 }
 0x30c   :  { %1606 = vmatmul.mubr.f32.vlgmr.msra.gmra.mxu1 %v912_v56  ;;  %v961_v56 = vpop.permute.xlu0 %960 }
 0x30d   :  { %1608 = vmatprep.mubr.f32.mxu1 %v913_v54 }
 0x310   :  { %1609 = vmatmul.mubr.f32.gmra.mxu1 %v914_v55 }
 0x311   :  { %1611 = vmatprep.mubr.f32.mxu1 %v915_v57  ;;  %v956_v57 = vpop.permute.xlu1 %955 }
 0x314   :  { %1612 = vmatmul.mubr.f32.gmra.mxu1 %v916_v58 }
 0x315   :  { %1614 = vmatprep.mubr.f32.mxu1 %v917_v59 }
 0x318   :  { %1615 = vmatmul.mubr.f32.gmra.mxu1 %v918_v60 }
 0x319   :  { %1617 = vmatprep.mubr.f32.mxu1 %v919_v61 }
 0x31c   :  { %1618 = vmatmul.mubr.f32.gmra.mxu1 %v920_v62  ;;  %v951_v62 = vpop.permute.xlu0 %950 }
 0x31d   :  { %1620 = vmatprep.mubr.f32.mxu1 %v921_v63 }
 0x320   :  { %1621 = vmatmul.mubr.f32.gmra.mxu1 %v922_v0 }
 0x321   :  { %1623 = vmatprep.mubr.f32.mxu1 %v923_v1  ;;  %v946_v1 = vpop.permute.xlu1 %945 }
 0x324   :  { %1624 = vmatmul.mubr.f32.gmra.mxu1 %v924_v2 }
 0x325   :  { %1626 = vmatprep.mubr.f32.mxu1 %v925_v3 }
 0x328   :  { %1627 = vmatmul.mubr.f32.gmra.mxu1 %v926_v4 }
 0x3cc   :  { %v2207_v6 = vpop.f32.mrf.mxu1 }
 0x3cd   :  { %v1095_v63 = vadd.f32 %v2207_v6, %v951_v62  ;;  %v1184_v6 = vld [vmem:[%s2249_s9] sm:$0x1]  ;;  %s1278_s9 = sshll.u32 %s1699_s13, 4  ;;  %s1279_s9 = int_to_ptr.vmem [resolvable:$true] %s1278_s9 }
 0x3ce   :  { %v2209_v7 = vpop.f32.mrf.mxu1  ;;  %s1674_s14 = scalar_lea.vmem %s1279_s9, 16  ;;  %s1678_s15 = scalar_lea.vmem %s1279_s9, 32 }
 0x3cf   :  { %v1090_v2 = vadd.f32 %v2209_v7, %v946_v1  ;;  %v1169_v4 = vmax.f32 %v1095_v63, 0.0  ;;  %p1675_p0 = scmp.ne.s32.totalorder %s1279_s9, %s1674_s14  ;;  %p1679_p1 = scmp.lt.s32.totalorder %s1279_s9, %s1279_s9 }
 0x3d0   :  { %v2211_v8 = vpop.f32.mrf.mxu1  ;;  %p1680_p2 = scmp.lt.s32.totalorder %s1678_s15, %s1674_s14 }
 0x3d1   :  { %v1105_v58 = vadd.f32 %v2211_v8, %v961_v56  ;;  %v1168_v8 = vmax.f32 %v1090_v2, 0.0 }
 0x3d2   :  { %v2213_v9 = vpop.f32.mrf.mxu1  ;;  %p1681_p3 = por %p1680_p2, %p1679_p1 }
 0x3d3   :  { %v1100_v60 = vadd.f32 %v2213_v9, %v956_v57  ;;  %v1171_v0 = vmax.f32 %v1105_v58, 0.0  ;;  %v1191_v9 = vlaneseq }
 0x3d4   :  { %v1613_v10 = vpop.f32.mrf.mxu1  ;;  %p1682_p4 = pnand %p1681_p3, %p1675_p0 }
 0x3d5   :  { %v1115_v52 = vadd.f32 %v1613_v10, %v971_v46  ;;  %v1170_v3 = vmax.f32 %v1100_v60, 0.0  ;;  %v1192_v7 = vshrl.u32 %v1191_v9, 7 }
 0x3d6   :  { %v1109_v11 = vpop.f32.mrf.mxu1 }
 0x3d7   :  { %v1110_v54 = vadd.f32 %v1109_v11, %v966_v49  ;;  %v1173_v59 = vmax.f32 %v1115_v52, 0.0  ;;  %v1193_v10 = vsub.s32 0, %v1192_v7  ;;  %v1189_v11 = vpop.permute.xlu0 %1188 }
 0x3d8   :  { %v1616_v13 = vpop.f32.mrf.mxu1 }
 0x3d9   :  { %v1125_v47 = vadd.f32 %v1616_v13, %v981_v40  ;;  %v1172_v61 = vmax.f32 %v1110_v54, 0.0 }
 0x3da   :  { %v1119_v15 = vpop.f32.mrf.mxu1 }
 0x3db   :  { %v1120_v50 = vadd.f32 %v1119_v15, %v976_v41  ;;  %v1175_v53 = vmax.f32 %v1125_v47, 0.0 }
 0x3dc   :  { %v1619_v16 = vpop.f32.mrf.mxu1 }
 0x3dd   :  { %v1135_v42 = vadd.f32 %v1619_v16, %v991_v28  ;;  %v1174_v55 = vmax.f32 %v1120_v50, 0.0 }
 0x3de   :  { %v1129_v18 = vpop.f32.mrf.mxu1 }
 0x3df   :  { %v1130_v44 = vadd.f32 %v1129_v18, %v986_v33  ;;  %v1177_v48 = vmax.f32 %v1135_v42, 0.0 }
 0x3e0   :  { %v1622_v20 = vpop.f32.mrf.mxu1 }
 0x3e1   :  { %v1145_v36 = vadd.f32 %v1622_v20, %v1001_v24  ;;  %v1176_v51 = vmax.f32 %v1130_v44, 0.0 }
 0x3e2   :  { %v1139_v21 = vpop.f32.mrf.mxu1 }
 0x3e3   :  { %v1140_v38 = vadd.f32 %v1139_v21, %v996_v23  ;;  %v1179_v43 = vmax.f32 %v1145_v36, 0.0 }
 0x3e4   :  { %v1625_v22 = vpop.f32.mrf.mxu1 }
 0x3e5   :  { %v1155_v30 = vadd.f32 %v1625_v22, %v1011_v17  ;;  %v1178_v45 = vmax.f32 %v1140_v38, 0.0 }
 0x3e6   :  { %v1149_v25 = vpop.f32.mrf.mxu1 }
 0x3e7   :  { %v1150_v34 = vadd.f32 %v1149_v25, %v1006_v19  ;;  %v1181_v37 = vmax.f32 %v1155_v30, 0.0 }
 0x3e8   :  { %v1628_v26 = vpop.f32.mrf.mxu1 }
 0x3e9   :  { %v1165_v27 = vadd.f32 %v1628_v26, %v1021_v12  ;;  %v1180_v39 = vmax.f32 %v1150_v34, 0.0  ;;  %v1194_v12 = vrot.slane %v1189_v11, %v1193_v10 }
 0x3ea   :  { %v1159_v29 = vpop.f32.mrf.mxu1 }
 0x3eb   :  { %v1183_v31 = vmax.f32 %v1165_v27, 0.0  ;;  %v1160_v32 = vadd.f32 %v1159_v29, %v1016_v14 }
 0x3ed   :  { %v1182_v35 = vmax.f32 %v1160_v32, 0.0  ;;  %1630 = vmatpush3.msra.mxu0 %v1183_v31 }
 0x3ee   :  { %1631 = vmatprep.subr.mxu0 %v1697_v5 }
 0x3ef   :  { %1632 = vmatpush3.msra.mxu0 %v1182_v35 }
 0x3f0   :  { %1633 = vmatprep.subr.mxu0 %v1697_v5 }
 0x3f1   :  { %1634 = vmatpush3.msra.mxu0 %v1181_v37 }
 0x3f2   :  { %1635 = vmatprep.subr.mxu0 %v1697_v5 }
 0x3f3   :  { %1636 = vmatpush3.msra.mxu0 %v1180_v39 }
 0x3f4   :  { %1637 = vmatprep.subr.mxu0 %v1697_v5 }
 0x3f5   :  { %1638 = vmatpush3.msra.mxu0 %v1179_v43 }
 0x3f6   :  { %1639 = vmatprep.subr.mxu0 %v1697_v5 }
 0x3f7   :  { %1640 = vmatpush3.msra.mxu0 %v1178_v45 }
 0x3f8   :  { %1641 = vmatprep.subr.mxu0 %v1697_v5 }
 0x3f9   :  { %1642 = vmatpush3.msra.mxu0 %v1177_v48 }
 0x3fa   :  { %1643 = vmatprep.subr.mxu0 %v1697_v5 }
 0x3fb   :  { %1644 = vmatpush3.msra.mxu0 %v1176_v51 }
 0x3fc   :  { %1645 = vmatprep.subr.mxu0 %v1697_v5 }
 0x3fd   :  { %1646 = vmatpush3.msra.mxu0 %v1175_v53 }
 0x3fe   :  { %1647 = vmatprep.subr.mxu0 %v1697_v5 }
 0x3ff   :  { %1648 = vmatpush3.msra.mxu0 %v1174_v55 }
 0x400   :  { %1649 = vmatprep.subr.mxu0 %v1697_v5 }
 0x401   :  { %1650 = vmatpush3.msra.mxu0 %v1173_v59 }
 0x402   :  { %1651 = vmatprep.subr.mxu0 %v1697_v5 }
 0x403   :  { %1652 = vmatpush3.msra.mxu0 %v1172_v61 }
 0x404   :  { %1653 = vmatprep.subr.mxu0 %v1697_v5 }
 0x405   :  { %1654 = vmatpush3.msra.mxu0 %v1171_v0 }
 0x406   :  { %1655 = vmatprep.subr.mxu0 %v1697_v5 }
 0x407   :  { %1656 = vmatpush3.msra.mxu0 %v1170_v3 }
 0x408   :  { %1657 = vmatprep.subr.mxu0 %v1697_v5 }
 0x409   :  { %1658 = vmatpush3.msra.mxu0 %v1169_v4 }
 0x40a   :  { %1659 = vmatprep.subr.mxu0 %v1697_v5 }
 0x40b   :  { %1660 = vmatpush3.msra.mxu0 %v1168_v8 }
 0x40c   :  { %1662 = vmatmul.mubr.f32.vlgmr.msra.gmra.mxu0 %v1184_v6 }
 0x4cc   :  { %v1261_v13 = vpop.f32.mrf.mxu0 }
 0x4cd   :  { %v1262_v14 = vadd.f32 %v1261_v13, %v1194_v12 }
 0x4ce   :  { %v1663_v15 = vpop.f32.mrf.mxu0 }
 0x4cf   :  { %v1265_v16 = vsub.f32 0.0, %v1262_v14 }
 0x4d1   :  { %v1266_v17 = vmul.f32 1.442695, %v1265_v16 }
 0x4d3   :  { %1670 = vpow2.f32 %v1266_v17 }
 0x4e0   :  { %v1671_v18 = vpop.eup %1670 }
 0x4e1   :  { %v1268_v19 = vadd.f32 1.0, %v1671_v18 }
 0x4e3   :  { %1672 = vrcp.f32 %v1268_v19 }
 0x4f0   :  { %v1673_v5 = vpop.eup %1672 }
 0x4f1   :  { %1271 = vst [vmem:[#allocation3] sm:$0x1] %v1673_v5 }
 0x4f2   :  { %1685 = shalt.err (!%p1682_p4)
}
 0x4f3   :  { %1281 = dma.vmem_to_hbm [thread:$0]  %s1279_s9, 16, %s2251_s11, [#allocation4]  }
 0x4f4   :  { %1694 = dma.done.wait [#allocation4], 16  }
 0x4f5   :  { %1695 = vsyncadd [#allocation4], 4294967280 }
 0x4f6   :  { %1285 = vsyncpa [#allocation4], 1 }

</bundles_post_ra>
